<compile_context>
chip_gen: v5e
topology: v5e:2x2
jax: 0.10.0
libtpu: 0.0.40
codegen_flags: <defaults>
</compile_context>

<pallas_src>
import functools

import jax
import jax.numpy as jnp
from jax import lax
from jax.experimental import pallas as pl
from jax.experimental.pallas import tpu as pltpu


def _round_up(x, m):
    return (x + m - 1) // m * m


# --------------------------------------------------------------------------
# Pass 1: diag[i] = sim(im[i], s[i]) computed row-wise (replaces the old
# masked-iota O(N^2) diagonal extraction with an O(N*D) VPU pass).
# --------------------------------------------------------------------------
def _diag_kernel(im_ref, s_ref, out_ref, *, measure):
    im = im_ref[...].astype(jnp.float32)
    s = s_ref[...].astype(jnp.float32)
    if measure == "order":
        d = jnp.maximum(s - im, 0.0)
        out_ref[...] = -jnp.sqrt(jnp.sum(d * d, axis=1, keepdims=True))
    else:
        out_ref[...] = jnp.sum(im * s, axis=1, keepdims=True)


# --------------------------------------------------------------------------
# Pass 2: tiled hinge costs + reductions.
#   grid = (i over im-row tiles, j over s-row tiles), j innermost.
#   row_acc (TI,1)        : running max/sum of cost_s over j for current i tile
#   col_acc (nj,1,TJ)     : running max/sum of cost_im over i for every j tile
#   out_ref (1,1)         : resident scalar accumulator (constant block index)
# --------------------------------------------------------------------------
def _loss_kernel(im_ref, s_ref, dcol_ref, drow_ref, out_ref, row_acc, col_acc,
                 *, margin, max_violation, measure, n_valid, d_chunk, precision):
    i = pl.program_id(0)
    j = pl.program_id(1)
    ni = pl.num_programs(0)
    nj = pl.num_programs(1)
    tile_i = im_ref.shape[0]
    tile_j = s_ref.shape[0]

    # ---- init resident accumulators --------------------------------------
    @pl.when((i == 0) & (j == 0))
    def _():
        out_ref[...] = jnp.zeros_like(out_ref)
        col_acc[...] = jnp.zeros_like(col_acc)

    @pl.when(j == 0)
    def _():
        row_acc[...] = jnp.zeros_like(row_acc)

    # ---- similarity scores for this (tile_i, tile_j) tile -----------------
    if measure == "order":
        # order_sim: score[a, b] = -sqrt(sum_d max(0, s[b,d] - im[a,d])^2)
        # accumulated over D chunks so the (TI, TJ, CK) temporary stays bounded
        # (never materialize an (N, N, D) tensor).
        nk = im_ref.shape[1] // d_chunk

        def body(c, sq):
            off = pl.multiple_of(c * d_chunk, d_chunk)
            a = im_ref[:, pl.ds(off, d_chunk)].astype(jnp.float32)   # (TI, CK)
            b = s_ref[:, pl.ds(off, d_chunk)].astype(jnp.float32)    # (TJ, CK)
            diff = jnp.maximum(b[None, :, :] - a[:, None, :], 0.0)   # (TI, TJ, CK)
            return sq + jnp.sum(diff * diff, axis=2)

        sq = lax.fori_loop(0, nk, body,
                           jnp.zeros((tile_i, tile_j), jnp.float32))
        scores = -jnp.sqrt(sq)
    else:
        # cosine_sim: im @ s.T on the MXU, native input dtype, f32 accumulation,
        # contracting dim 1 of both operands (no explicit transpose, no up-cast).
        scores = lax.dot_general(
            im_ref[...], s_ref[...],
            dimension_numbers=(((1,), (1,)), ((), ())),
            preferred_element_type=jnp.float32,
            precision=precision)

    # ---- validity mask: off-diagonal and inside the un-padded batch -------
    rows = i * tile_i + lax.broadcasted_iota(jnp.int32, (tile_i, tile_j), 0)
    cols = j * tile_j + lax.broadcasted_iota(jnp.int32, (tile_i, tile_j), 1)
    valid = (rows != cols) & (rows < n_valid) & (cols < n_valid)

    d1 = dcol_ref[...]        # (TI, 1): diag for the rows of this tile
    d2 = drow_ref[...]        # (1, TJ): diag for the cols of this tile

    if max_violation:
        reduce_rows = functools.partial(jnp.max, axis=1, keepdims=True)
        reduce_cols = functools.partial(jnp.max, axis=0, keepdims=True)
        combine = jnp.maximum
    else:
        reduce_rows = functools.partial(jnp.sum, axis=1, keepdims=True)
        reduce_cols = functools.partial(jnp.sum, axis=0, keepdims=True)
        combine = jnp.add

    # cost_s: caption negatives per image row  -> reduced over columns (j axis)
    cost_s = jnp.where(valid, jnp.maximum(margin + scores - d1, 0.0), 0.0)
    row_acc[...] = combine(row_acc[...], reduce_rows(cost_s))

    # cost_im: image negatives per caption col -> reduced over rows (i axis)
    cost_im = jnp.where(valid, jnp.maximum(margin + scores - d2, 0.0), 0.0)
    col_acc[j] = combine(col_acc[j], reduce_cols(cost_im))

    # ---- finalize ----------------------------------------------------------
    @pl.when(j == nj - 1)
    def _():
        out_ref[...] = out_ref[...] + jnp.reshape(jnp.sum(row_acc[...]), (1, 1))

    @pl.when((i == ni - 1) & (j == nj - 1))
    def _():
        out_ref[...] = out_ref[...] + jnp.reshape(jnp.sum(col_acc[...]), (1, 1))


def triplet_contrastive_loss(im, s, *, margin=0.2, max_violation=False,
                             measure="cosine"):
    """Pallas TPU equivalent of TripletContrastiveLoss.forward(im, s) -> scalar."""
    n, d = im.shape
    assert s.shape == (n, d)

    # --- tile selection -----------------------------------------------------
    # cosine: MXU-friendly 256-row tiles; order: smaller tiles so the
    # (TI, TJ, D_chunk) elementwise working set stays bounded.
    cap = 64 if measure == "order" else 256
    tile_n = min(cap, _round_up(n, 8))
    d_pad = _round_up(d, 128)
    d_chunk = 128
    itemsize = jnp.dtype(im.dtype).itemsize
    # keep double-buffered im/s input blocks well inside the default scoped
    # VMEM budget (also safe for v7x's smaller 64 MiB physical VMEM).
    while tile_n >= 128 and tile_n % 16 == 0 and \
            4 * tile_n * d_pad * itemsize > (16 << 20):
        tile_n //= 2
    n_pad = _round_up(n, tile_n)
    ni = n_pad // tile_n
    nj = n_pad // tile_n

    if (n_pad, d_pad) != (n, d):
        pad = ((0, n_pad - n), (0, d_pad - d))
        im_p = jnp.pad(im, pad)
        s_p = jnp.pad(s, pad)
    else:
        im_p, s_p = im, s

    precision = (lax.Precision.HIGHEST if im_p.dtype == jnp.float32
                 else lax.Precision.DEFAULT)

    # --- pass 1: per-row diagonal similarities ------------------------------
    diag_col = pl.pallas_call(
        functools.partial(_diag_kernel, measure=measure),
        out_shape=jax.ShapeDtypeStruct((n_pad, 1), jnp.float32),
        grid=(ni,),
        in_specs=[pl.BlockSpec((tile_n, d_pad), lambda i: (i, 0)),
                  pl.BlockSpec((tile_n, d_pad), lambda i: (i, 0))],
        out_specs=pl.BlockSpec((tile_n, 1), lambda i: (i, 0)),
        compiler_params=pltpu.CompilerParams(
            dimension_semantics=("parallel",)),
    )(im_p, s_p)
    diag_row = diag_col.reshape(1, n_pad)   # free relayout (contiguous)

    # --- pass 2: tiled hinge costs + reductions ------------------------------
    cost = pl.CostEstimate(
        flops=2 * n_pad * n_pad * d_pad + 8 * n_pad * n_pad,
        transcendentals=(n_pad * n_pad) if measure == "order" else 0,
        bytes_accessed=(ni + 1) * n_pad * d_pad * itemsize + 8 * n_pad + 4)

    kernel = functools.partial(
        _loss_kernel,
        margin=float(margin),
        max_violation=bool(max_violation),
        measure=measure,
        n_valid=n,
        d_chunk=d_chunk,
        precision=precision)

    out = pl.pallas_call(
        kernel,
        out_shape=jax.ShapeDtypeStruct((1, 1), jnp.float32),
        grid=(ni, nj),
        in_specs=[
            pl.BlockSpec((tile_n, d_pad), lambda i, j: (i, 0)),   # im rows of tile i
            pl.BlockSpec((tile_n, d_pad), lambda i, j: (j, 0)),   # s  rows of tile j
            pl.BlockSpec((tile_n, 1), lambda i, j: (i, 0)),       # diag (column form)
            pl.BlockSpec((1, tile_n), lambda i, j: (0, j)),       # diag (row form)
        ],
        out_specs=pl.BlockSpec((1, 1), lambda i, j: (0, 0)),
        scratch_shapes=[
            pltpu.VMEM((tile_n, 1), jnp.float32),       # row reduce of cost_s
            pltpu.VMEM((nj, 1, tile_n), jnp.float32),   # col reduce of cost_im
        ],
        compiler_params=pltpu.CompilerParams(
            dimension_semantics=("arbitrary", "arbitrary")),
        cost_estimate=cost,
    )(im_p, s_p, diag_col, diag_row)
    # TODO(synk): a two-pass split (im/s roles swapped) would allow "parallel"
    # outer-axis semantics for v7x megacore; single-pass keeps one matmul sweep.
    return out[0, 0]


def _reference_loss(im, s, *, margin=0.2, max_violation=False, measure="cosine"):
    """Pure-JAX reference mirroring the PyTorch forward."""
    im = im.astype(jnp.float32)
    s = s.astype(jnp.float32)
    if measure == "order":
        ymx = jnp.maximum(s[:, None, :] - im[None, :, :], 0.0)
        scores = (-jnp.sqrt(jnp.sum(ymx ** 2, axis=2))).T
    else:
        scores = jnp.dot(im, s.T, precision=lax.Precision.HIGHEST)
    diag = jnp.diag(scores)[:, None]
    cost_s = jnp.maximum(margin + scores - diag, 0.0)
    cost_im = jnp.maximum(margin + scores - diag.T, 0.0)
    eye = jnp.eye(scores.shape[0], dtype=bool)
    cost_s = jnp.where(eye, 0.0, cost_s)
    cost_im = jnp.where(eye, 0.0, cost_im)
    if max_violation:
        return jnp.sum(jnp.max(cost_s, axis=1)) + jnp.sum(jnp.max(cost_im, axis=0))
    return jnp.sum(cost_s) + jnp.sum(cost_im)


if __name__ == "__main__":
    # Small deterministic inputs: batch=8 image/sentence embedding pairs, dim=32.
    key = jax.random.PRNGKey(0)
    k_im, k_s = jax.random.split(key)
    N, D = 8, 32
    im = jax.random.normal(k_im, (N, D), dtype=jnp.float32)
    s = jax.random.normal(k_s, (N, D), dtype=jnp.float32)

    ok = True
    for measure in ("cosine", "order"):
        for max_violation in (False, True):
            out = triplet_contrastive_loss(
                im, s, margin=0.2, max_violation=max_violation, measure=measure)
            out = jax.block_until_ready(out)
            ref = _reference_loss(
                im, s, margin=0.2, max_violation=max_violation, measure=measure)
            if not jnp.allclose(out, ref, rtol=1e-4, atol=1e-4):
                ok = False

    if ok:
        print("KERNEL_OK")
</pallas_src>

<mosaic_0001>
module attributes {stable_mosaic.version = 11 : i64} {
  func.func @_diag_kernel(%arg0: i32, %arg1: memref<8x128xf32, #tpu.memory_space<vmem>>, %arg2: memref<8x128xf32, #tpu.memory_space<vmem>>, %arg3: memref<8x1xf32, #tpu.memory_space<vmem>>) attributes {dimension_semantics = [#tpu.dimension_semantics<parallel>], iteration_bounds = array<i64: 1>, scalar_prefetch = 0 : i64, scratch_operands = 0 : i64, tpu.core_type = #tpu.core_type<tc>, window_params = [{transform_indices = @transform_0, window_bounds = array<i64: 8, 128>}, {transform_indices = @transform_1, window_bounds = array<i64: 8, 128>}, {transform_indices = @transform_2, window_bounds = array<i64: 8, 1>}]} {
    %c0 = arith.constant 0 : index
    %c0_0 = arith.constant 0 : index
    %0 = vector.load %arg1[%c0, %c0_0] : memref<8x128xf32, #tpu.memory_space<vmem>>, vector<8x128xf32>
    %c0_1 = arith.constant 0 : index
    %c0_2 = arith.constant 0 : index
    %1 = vector.load %arg2[%c0_1, %c0_2] : memref<8x128xf32, #tpu.memory_space<vmem>>, vector<8x128xf32>
    %2 = arith.mulf %0, %1 : vector<8x128xf32>
    %cst = arith.constant dense<0.000000e+00> : vector<8xf32>
    %3 = vector.multi_reduction <add>, %2, %cst [1] : vector<8x128xf32> to vector<8xf32>
    %4 = vector.shape_cast %3 : vector<8xf32> to vector<8x1xf32>
    %c0_3 = arith.constant 0 : index
    %c0_4 = arith.constant 0 : index
    %5 = vector.load %arg3[%c0_3, %c0_4] : memref<8x1xf32, #tpu.memory_space<vmem>>, vector<8x1xf32>
    tpu.vector_store %arg3[%c0_3, %c0_4], %4 {strides = array<i32>} : memref<8x1xf32, #tpu.memory_space<vmem>>, vector<8x1xf32>,
    return
  }
  func.func @transform_0(%arg0: i32) -> (i32, i32) {
    %c0_i32 = arith.constant 0 : i32
    %c0_i32_0 = arith.constant 0 : i32
    return %arg0, %c0_i32 : i32, i32
  }
  func.func @transform_1(%arg0: i32) -> (i32, i32) {
    %c0_i32 = arith.constant 0 : i32
    %c0_i32_0 = arith.constant 0 : i32
    return %arg0, %c0_i32 : i32, i32
  }
  func.func @transform_2(%arg0: i32) -> (i32, i32) {
    %c0_i32 = arith.constant 0 : i32
    %c0_i32_0 = arith.constant 0 : i32
    return %arg0, %c0_i32 : i32, i32
  }
}

</mosaic_0001>

<bundles_post_ra>
// kernel: tpu_custom_call.1
= control target key start
LH: loop header
LB: loop body
LE: loop exit
PB: predicated region body
PF: predicated region fallthrough
CT: control target
= control target key end

     0   :  { %7 = vsyncpa [#allocation3], 0  ;;  %s132_s0 = inlined_call_operand.hbm [shape: f32[8,128], index: 0, kind: input, shape index: {}]   ;;  %s133_s1 = inlined_call_operand.hbm [shape: f32[8,128], index: 1, kind: input, shape index: {}]   ;;  %s134_s2 = inlined_call_operand.vmem [shape: f32[8,1], index: 2, kind: output, shape index: {}]  }
   0x1   :  { %s14_s11 = sshll.u32 %s132_s0, 4  ;;  %s15_s11 = int_to_ptr.hbm [resolvable:$true] %s14_s11 }
   0x2   :  { %8 = vsyncpa [#allocation5], 0  ;;  %s106_s12 = smov [#allocation2]   ;;  %s25_s16 = sshll.u32 %s133_s1, 4  ;;  %s26_s16 = int_to_ptr.hbm [resolvable:$true] %s25_s16 }
   0x3   :  { %s16_s13 = sshll.u32 %s106_s12, 4  ;;  %s107_s17 = smov [#allocation4]   ;;  %s17_s13 = int_to_ptr.vmem [resolvable:$true] %s16_s13 }
   0x4   :  { %19 = dma.hbm_to_vmem [thread:$0]  %s15_s11, 128, %s17_s13, [#allocation3]  }
   0x5   :  { %s27_s18 = sshll.u32 %s107_s17, 4  ;;  %s28_s18 = int_to_ptr.vmem [resolvable:$true] %s27_s18 }
   0x6   :  { %30 = dma.hbm_to_vmem [thread:$0]  %s26_s16, 128, %s28_s18, [#allocation5]  }
   0x7   :  { %102 = dma.done.wait [#allocation3], 128  }
   0x8   :  { %103 = vsyncadd [#allocation3], 4294967168 }
   0x9   :  { %104 = dma.done.wait [#allocation5], 128  }
   0xa   :  { %105 = vsyncadd [#allocation5], 4294967168  ;;  %v39_v0 = vld [vmem:[#allocation2] sm:$0xff]  ;;  %v40_v1 = vld [vmem:[#allocation4] sm:$0xff]  ;;  %vm44_vm0 = vcmask 7168  }
   0xb   :  { %v41_v2 = vmul.f32 %v40_v1, %v39_v0 }
   0xd   :  { %42 = vadd.xlane.f32.xlu0 %v41_v2 }
  0x80   :  { %v43_v3 = vpop.xlane.xlu0 %42 }
  0x81   :  { %45 = vst.msk [vmem:[%s134_s2] sm:$0xff] %vm44_vm0, %v43_v3 }
  0x82   :  { %50 = vsyncpa [#allocation3], 1 }
  0x83   :  { %51 = vsyncpa [#allocation5], 1 }

</bundles_post_ra>
